<compile_context>
chip_gen: v7x
topology: tpu7x:2x2x1
jax: 0.10.0
libtpu: 0.0.40
codegen_flags: <defaults>
</compile_context>

<pallas_src>
import functools

import jax
import jax.numpy as jnp
from jax.experimental import pallas as pl
from jax.experimental.pallas import tpu as pltpu

EPS = 1e-5
LANE = 128


def _round_up(n, m):
    return ((n + m - 1) // m) * m


def _vmem_limit_bytes():
    """Scoped-VMEM budget: ~3/4 of physical VMEM, capped at 96 MiB.

    128 MiB parts (v5e/v6e) -> 96 MiB; 64 MiB parts (v7x) -> 48 MiB."""
    try:
        cap = int(pltpu.get_tpu_info().vmem_capacity_bytes)
    except Exception:
        cap = 64 * 1024 * 1024
    return int(min(96 * 1024 * 1024, cap * 3 // 4))


def _default_tile_h(hh, ww, c_p, cdt_bytes, vmem_limit):
    """Largest divisor of H whose pass-2 working set fits a conservative VMEM budget.

    Bigger tiles fill the 256-wide MXU M dimension on v6e/v7x (want th*W >= 256)
    and amortize the ~0.35us per-grid-step pipeline overhead."""
    budget = vmem_limit // 3
    image = 2 * hh * ww * c_p * cdt_bytes              # resident h1 image (2 bufs)
    best = 1
    for th in range(1, hh + 1):
        if hh % th:
            continue
        slab = th * ww * 9 * c_p * cdt_bytes           # im2col scratch
        padt = (th + 2) * (ww + 2) * c_p * cdt_bytes   # zero-padded tile scratch
        bufs = 4 * th * ww * c_p * cdt_bytes           # double-buffered in/out tiles
        if image + slab + padt + bufs <= budget:
            best = th
    return best


# ------------------------------ kernels ------------------------------

def _conv1_kernel(x_ref, w1_ref, h1_ref, st_ref):
    """1x1 conv (Cin -> Cp) on one (TH, W) row tile + partial BN1 statistics."""
    th, w, ci = x_ref.shape
    co = w1_ref.shape[1]
    x2d = x_ref[...].reshape(th * w, ci)
    h = jnp.dot(x2d, w1_ref[...], preferred_element_type=jnp.float32)
    h1_ref[...] = h.reshape(th, w, co).astype(h1_ref.dtype)
    st_ref[0:1, :] = jnp.sum(h, axis=0, keepdims=True)
    st_ref[1:2, :] = jnp.sum(h * h, axis=0, keepdims=True)


def _conv2_kernel(h1_ref, a1_ref, c1_ref, w2_ref, h2_ref, st_ref, pad_ref, col_ref):
    """BN1+ReLU -> 3x3 conv (stride 1, pad 1) as ONE deep im2col matmul, per row tile.

    h1_ref holds the whole (H, W, C) image of the current batch element (resident
    across the H-tile grid axis).  The current row tile plus a 1-row halo is
    normalized into the zero-padded VMEM scratch `pad_ref`, from which the
    (TH*W, 9*C) im2col slab `col_ref` is built and fed to a single MXU matmul.
    """
    h, w, c = h1_ref.shape            # full image height / width / padded channels
    th = h2_ref.shape[0]              # row-tile height
    cdt = pad_ref.dtype
    a1 = a1_ref[...].reshape(1, 1, c)
    c1 = c1_ref[...].reshape(1, 1, c)

    def bn_relu(v):                   # f32 BN affine + ReLU, cast to matmul dtype
        return jnp.maximum(v * a1 + c1, 0.0).astype(cdt)

    base = pl.multiple_of(pl.program_id(1) * th, th)

    # Zero the left/right padding columns (cheap; redone each step so nothing relies
    # on scratch state surviving megacore grid partitioning).
    pad_ref[:, 0:1, :] = jnp.zeros((th + 2, 1, c), cdt)
    pad_ref[:, w + 1:w + 2, :] = jnp.zeros((th + 2, 1, c), cdt)

    # Interior rows of this tile.
    pad_ref[1:th + 1, 1:w + 1, :] = bn_relu(h1_ref[pl.ds(base, th)])

    # Halo rows: clamped row read * validity mask -> exact zero padding off-image.
    top = bn_relu(h1_ref[pl.ds(jnp.maximum(base - 1, 0), 1)])
    pad_ref[0:1, 1:w + 1, :] = top * (base > 0).astype(cdt)
    bot = bn_relu(h1_ref[pl.ds(jnp.minimum(base + th, h - 1), 1)])
    pad_ref[th + 1:th + 2, 1:w + 1, :] = bot * (base + th < h).astype(cdt)

    # im2col slab: columns [tap*C : (tap+1)*C] = shifted window of the padded tile.
    for tap in range(9):
        ky, kx = tap // 3, tap % 3
        col_ref[:, tap * c:(tap + 1) * c] = (
            pad_ref[ky:ky + th, kx:kx + w, :].reshape(th * w, c))

    # One deep matmul (K = 9*C) instead of 9 shallow accumulating dots.
    acc = jnp.dot(col_ref[...], w2_ref[...], preferred_element_type=jnp.float32)
    h2_ref[...] = acc.reshape(th, w, c).astype(h2_ref.dtype)
    st_ref[0:1, :] = jnp.sum(acc, axis=0, keepdims=True)
    st_ref[1:2, :] = jnp.sum(acc * acc, axis=0, keepdims=True)


def _conv3_kernel(h2_ref, a2_ref, c2_ref, w3_ref, h3_ref, st_ref):
    """BN2+ReLU -> 1x1 conv (Cp -> Cout) per row tile + partial BN3/SE-pool stats."""
    th, w, ci = h2_ref.shape
    co = w3_ref.shape[1]
    a2 = a2_ref[...].reshape(1, 1, ci)
    c2 = c2_ref[...].reshape(1, 1, ci)
    t = jnp.maximum(h2_ref[...] * a2 + c2, 0.0).astype(w3_ref.dtype)
    h3 = jnp.dot(t.reshape(th * w, ci), w3_ref[...], preferred_element_type=jnp.float32)
    h3_ref[...] = h3.reshape(th, w, co).astype(h3_ref.dtype)
    st_ref[0:1, :] = jnp.sum(h3, axis=0, keepdims=True)
    st_ref[1:2, :] = jnp.sum(h3 * h3, axis=0, keepdims=True)


def _bn3_se_kernel(st_ref, g_ref, b_ref, sw1_ref, sb1_ref, sw2_ref, sb2_ref,
                   a_ref, c_ref, s_ref, *, count, hw):
    """Fused: BN3 affine from stats + SE global-average-pool + fc->ReLU->fc->sigmoid."""
    st = st_ref[...]                                       # (N, T, 8, C) f32
    per_n_sum = jnp.sum(st[:, :, 0:1, :], axis=(1, 2))     # (N, C)
    per_n_sq = jnp.sum(st[:, :, 1:2, :], axis=(1, 2))      # (N, C)
    tot = jnp.sum(per_n_sum, axis=0, keepdims=True)        # (1, C)
    totq = jnp.sum(per_n_sq, axis=0, keepdims=True)
    mean = tot / count
    var = jnp.maximum(totq / count - mean * mean, 0.0)     # biased variance
    a = jax.lax.rsqrt(var + EPS) * g_ref[...]
    c = b_ref[...] - mean * a
    a_ref[...] = a
    c_ref[...] = c
    # SE squeeze: BN3 is a per-channel affine, so pooling the raw conv3 sums and
    # applying the affine afterwards is exact.
    pooled = (per_n_sum / hw) * a + c                      # (N, C)
    z = jnp.dot(pooled, sw1_ref[...], preferred_element_type=jnp.float32) + sb1_ref[...]
    z = jnp.maximum(z, 0.0)
    z = jnp.dot(z, sw2_ref[...], preferred_element_type=jnp.float32) + sb2_ref[...]
    s_ref[...] = jax.nn.sigmoid(z).reshape(s_ref.shape)


def _finalize_kernel(h3_ref, a3_ref, c3_ref, s_ref, x_ref, o_ref):
    """BN3 -> SE channel scale -> residual add -> ReLU, per row tile."""
    th, w, co = h3_ref.shape
    a3 = a3_ref[...].reshape(1, 1, co)
    c3 = c3_ref[...].reshape(1, 1, co)
    s = s_ref[...].reshape(1, 1, co)
    y = (h3_ref[...].astype(jnp.float32) * a3 + c3) * s + x_ref[...].astype(jnp.float32)
    o_ref[...] = jnp.maximum(y, 0.0).astype(o_ref.dtype)


# ------------------------------ wrappers ------------------------------

def bottleneck_se_block_nhwc(x_nhwc, params, *, compute_dtype=jnp.bfloat16, tile_h=None):
    """BottleneckSEBlock forward (stride=1, downsample=None), training-mode BatchNorm.

    x_nhwc: (N, H, W, Cin) with Cin == 4 * out_planes.  Returns NHWC output in
    compute_dtype.  Matmul accumulation and all BN math are always f32.
    """
    (w1, g1, b1, w2, g2, b2, w3, g3, b3, sw1, sb1, sw2, sb2) = params
    n, hh, ww, cin = x_nhwc.shape
    cp = w1.shape[1]
    cout = w3.shape[1]
    cr = sw1.shape[1]
    assert cin == cout, "downsample=None requires in_planes == out_planes * 4"

    f32 = jnp.float32
    cdt = compute_dtype
    cdt_bytes = jnp.dtype(cdt).itemsize
    cin_p, cp_p, cout_p, cr_p = (_round_up(c, LANE) for c in (cin, cp, cout, cr))

    vmem_limit = _vmem_limit_bytes()
    th = tile_h if tile_h is not None else _default_tile_h(
        hh, ww, max(cp_p, cout_p), cdt_bytes, vmem_limit)
    assert hh % th == 0
    n_th = hh // th
    grid = (n, n_th)

    # ---- layout / padding (lane-dense channels); activations stored in cdt ----
    x_p = jnp.pad(x_nhwc.astype(cdt), ((0, 0), (0, 0), (0, 0), (0, cin_p - cin)))

    def pad_mat(m, r, c):
        return jnp.pad(m, ((0, r - m.shape[0]), (0, c - m.shape[1])))

    def pad_vec(v, c, fill=0.0):
        return jnp.pad(v, (0, c - v.shape[0]), constant_values=fill).astype(f32)

    w1_p = pad_mat(w1, cin_p, cp_p).astype(cdt)
    w2_p = jnp.pad(w2, ((0, 0), (0, cp_p - cp), (0, cp_p - cp)))
    w2_p = w2_p.reshape(9 * cp_p, cp_p).astype(cdt)           # rows: tap-major, then cin
    w3_p = pad_mat(w3, cp_p, cout_p).astype(cdt)
    g1_p, b1_p = pad_vec(g1, cp_p, 1.0), pad_vec(b1, cp_p)
    g2_p, b2_p = pad_vec(g2, cp_p, 1.0), pad_vec(b2, cp_p)
    g3_p = pad_vec(g3, cout_p, 1.0).reshape(1, cout_p)
    b3_p = pad_vec(b3, cout_p).reshape(1, cout_p)
    sw1_p = pad_mat(sw1, cout_p, cr_p).astype(f32)
    sb1_p = pad_vec(sb1, cr_p).reshape(1, cr_p)
    sw2_p = pad_mat(sw2, cr_p, cout_p).astype(f32)
    sb2_p = pad_vec(sb2, cout_p).reshape(1, cout_p)

    # ---- common specs ----
    grid_params = pltpu.CompilerParams(
        dimension_semantics=("parallel", "parallel"),
        vmem_limit_bytes=vmem_limit)

    def tile_spec(c):        # one (TH, W, c) row tile per grid step
        return pl.BlockSpec((None, th, ww, c), lambda i, j: (i, j, 0, 0))

    def image_spec(c):       # full (H, W, c) image of the current batch element
        return pl.BlockSpec((None, hh, ww, c), lambda i, j: (i, 0, 0, 0))

    def stats_spec(c):       # per-(batch, tile) partial statistics block, (8, c)
        return pl.BlockSpec((None, None, 8, c), lambda i, j: (i, j, 0, 0))

    def const_spec(shape):   # grid-invariant operand (weights / per-channel affine)
        return pl.BlockSpec(shape, lambda i, j: tuple(0 for _ in shape))

    def stats_shape(c):
        return jax.ShapeDtypeStruct((n, n_th, 8, c), f32)

    count = float(n * hh * ww)

    def bn_affine(stats, gamma, beta):
        """Reduce per-tile (sum, sumsq) -> per-channel BN scale/shift (f32 glue)."""
        s = jnp.sum(stats[:, :, 0, :], axis=(0, 1))
        sq = jnp.sum(stats[:, :, 1, :], axis=(0, 1))
        mean = s / count
        var = jnp.maximum(sq / count - mean * mean, 0.0)      # biased variance
        a = jax.lax.rsqrt(var + EPS) * gamma
        c = beta - mean * a
        return a.reshape(1, -1), c.reshape(1, -1)

    # ---- pass 1: conv1 (1x1) + BN1 partial stats ----
    h1, st1 = pl.pallas_call(
        _conv1_kernel,
        grid=grid,
        in_specs=[tile_spec(cin_p), const_spec((cin_p, cp_p))],
        out_specs=(tile_spec(cp_p), stats_spec(cp_p)),
        out_shape=(jax.ShapeDtypeStruct((n, hh, ww, cp_p), cdt), stats_shape(cp_p)),
        compiler_params=grid_params,
    )(x_p, w1_p)
    a1, c1 = bn_affine(st1, g1_p, b1_p)

    # ---- pass 2: BN1+ReLU -> 3x3 conv via im2col + BN2 partial stats ----
    h2, st2 = pl.pallas_call(
        _conv2_kernel,
        grid=grid,
        in_specs=[image_spec(cp_p), const_spec((1, cp_p)), const_spec((1, cp_p)),
                  const_spec((9 * cp_p, cp_p))],
        out_specs=(tile_spec(cp_p), stats_spec(cp_p)),
        out_shape=(jax.ShapeDtypeStruct((n, hh, ww, cp_p), cdt), stats_shape(cp_p)),
        scratch_shapes=[pltpu.VMEM((th + 2, ww + 2, cp_p), cdt),      # padded tile
                        pltpu.VMEM((th * ww, 9 * cp_p), cdt)],        # im2col slab
        compiler_params=grid_params,
    )(h1, a1, c1, w2_p)
    a2, c2 = bn_affine(st2, g2_p, b2_p)

    # ---- pass 3: BN2+ReLU -> conv3 (1x1) + BN3 / SE-pool partial stats ----
    h3, st3 = pl.pallas_call(
        _conv3_kernel,
        grid=grid,
        in_specs=[tile_spec(cp_p), const_spec((1, cp_p)), const_spec((1, cp_p)),
                  const_spec((cp_p, cout_p))],
        out_specs=(tile_spec(cout_p), stats_spec(cout_p)),
        out_shape=(jax.ShapeDtypeStruct((n, hh, ww, cout_p), cdt), stats_shape(cout_p)),
        compiler_params=grid_params,
    )(h2, a2, c2, w3_p)

    # ---- pass 4 (tiny, single dispatch): BN3 affine + SE pool + excitation ----
    vmem = pl.BlockSpec(memory_space=pltpu.MemorySpace.VMEM)
    a3, c3, s = pl.pallas_call(
        functools.partial(_bn3_se_kernel, count=count, hw=float(hh * ww)),
        in_specs=[vmem] * 7,
        out_specs=(vmem, vmem, vmem),
        out_shape=(jax.ShapeDtypeStruct((1, cout_p), f32),
                   jax.ShapeDtypeStruct((1, cout_p), f32),
                   jax.ShapeDtypeStruct((n, 1, cout_p), f32)),
        compiler_params=pltpu.CompilerParams(vmem_limit_bytes=vmem_limit),
    )(st3, g3_p, b3_p, sw1_p, sb1_p, sw2_p, sb2_p)

    # ---- pass 5: BN3 -> SE scale -> residual add -> ReLU (output aliased onto h3) ----
    out_p = pl.pallas_call(
        _finalize_kernel,
        grid=grid,
        in_specs=[tile_spec(cout_p), const_spec((1, cout_p)), const_spec((1, cout_p)),
                  pl.BlockSpec((None, 1, cout_p), lambda i, j: (i, 0, 0)),
                  tile_spec(cin_p)],
        out_specs=tile_spec(cout_p),
        out_shape=jax.ShapeDtypeStruct((n, hh, ww, cout_p), cdt),
        input_output_aliases={0: 0},
        compiler_params=grid_params,
    )(h3, a3, c3, s, x_p)

    return out_p if cout_p == cout else out_p[..., :cout]


def bottleneck_se_block(x_nchw, params, *, compute_dtype=jnp.bfloat16, tile_h=None):
    """NCHW (PyTorch-layout) compatibility wrapper.

    # TODO(synk): keep the surrounding model NHWC to drop these boundary transposes
    # (each is a full-tensor HBM pass, comparable to a whole kernel pass here).
    """
    x = jnp.transpose(x_nchw, (0, 2, 3, 1))
    out = bottleneck_se_block_nhwc(x, params, compute_dtype=compute_dtype, tile_h=tile_h)
    return jnp.transpose(out, (0, 3, 1, 2))


# ------------------------- pure-JAX reference (for checking) -------------------------
def reference(x_nchw, params):
    (w1, g1, b1, w2, g2, b2, w3, g3, b3, sw1, sb1, sw2, sb2) = params
    cp = w1.shape[1]

    def bn(h, g, b):
        mean = h.mean(axis=(0, 1, 2), keepdims=True)
        var = ((h - mean) ** 2).mean(axis=(0, 1, 2), keepdims=True)
        return (h - mean) * jax.lax.rsqrt(var + EPS) * g + b

    x = jnp.transpose(x_nchw, (0, 2, 3, 1)).astype(jnp.float32)
    h = jnp.einsum('nhwc,cd->nhwd', x, w1)
    h = jax.nn.relu(bn(h, g1, b1))
    w2_hwio = w2.reshape(3, 3, cp, cp)
    h = jax.lax.conv_general_dilated(h, w2_hwio, (1, 1), 'SAME',
                                     dimension_numbers=('NHWC', 'HWIO', 'NHWC'))
    h = jax.nn.relu(bn(h, g2, b2))
    h = jnp.einsum('nhwc,cd->nhwd', h, w3)
    h = bn(h, g3, b3)
    pooled = h.mean(axis=(1, 2))
    s = jax.nn.relu(pooled @ sw1 + sb1)
    s = jax.nn.sigmoid(s @ sw2 + sb2)
    out = h * s[:, None, None, :] + x
    return jnp.transpose(jax.nn.relu(out), (0, 3, 1, 2))


def make_params(key, in_planes, out_planes, reduction=16):
    cin, cp = in_planes, out_planes
    cout = out_planes * 4
    cr = max(cout // reduction, 1)
    ks = jax.random.split(key, 16)
    nrm = jax.random.normal
    # conv weights stored pre-transposed to (in, out) / tap-major for the kernels
    w1 = nrm(ks[0], (cin, cp), jnp.float32) * 0.1            # conv1: 1x1, Cin -> Cp
    g1 = 1.0 + 0.1 * nrm(ks[1], (cp,), jnp.float32)
    b1 = 0.1 * nrm(ks[2], (cp,), jnp.float32)
    w2 = nrm(ks[3], (9, cp, cp), jnp.float32) * 0.1          # conv2: 3x3, [(ky,kx), in, out]
    g2 = 1.0 + 0.1 * nrm(ks[4], (cp,), jnp.float32)
    b2 = 0.1 * nrm(ks[5], (cp,), jnp.float32)
    w3 = nrm(ks[6], (cp, cout), jnp.float32) * 0.1           # conv3: 1x1, Cp -> Cout
    g3 = 1.0 + 0.1 * nrm(ks[7], (cout,), jnp.float32)
    b3 = 0.1 * nrm(ks[8], (cout,), jnp.float32)
    sw1 = nrm(ks[9], (cout, cr), jnp.float32) * 0.1          # SE fc1 (1x1 conv w/ bias)
    sb1 = 0.1 * nrm(ks[10], (cr,), jnp.float32)
    sw2 = nrm(ks[11], (cr, cout), jnp.float32) * 0.1         # SE fc2 (1x1 conv w/ bias)
    sb2 = 0.1 * nrm(ks[12], (cout,), jnp.float32)
    return (w1, g1, b1, w2, g2, b2, w3, g3, b3, sw1, sb1, sw2, sb2)


if __name__ == "__main__":
    N, H, W = 2, 16, 16
    out_planes = 8
    in_planes = out_planes * 4        # downsample=None => residual needs Cin == 4*out_planes
    reduction = 16

    key = jax.random.PRNGKey(0)
    kx, kp = jax.random.split(key)
    x = jax.random.normal(kx, (N, in_planes, H, W), jnp.float32)
    params = make_params(kp, in_planes, out_planes, reduction)

    ref = jax.block_until_ready(reference(x, params))

    # f32 path (f32 operands + f32 intermediates): tight check against the f32 reference.
    out_f32 = jax.block_until_ready(
        bottleneck_se_block(x, params, compute_dtype=jnp.float32))
    assert out_f32.shape == (N, in_planes, H, W)
    assert jnp.allclose(out_f32, ref, atol=1e-4, rtol=1e-4), (
        f"f32 max abs diff = {jnp.max(jnp.abs(out_f32 - ref))}")

    # Default bf16 path (bf16 matmul operands AND bf16-stored intermediates; f32
    # accumulation + f32 BN statistics): bf16 rounding through three matmul+BN
    # stages gives a few-percent relative error, so a loose tolerance is used.
    out_bf16 = jax.block_until_ready(bottleneck_se_block(x, params))
    assert out_bf16.shape == (N, in_planes, H, W)
    assert jnp.allclose(out_bf16.astype(jnp.float32), ref, atol=1.5e-1, rtol=1.5e-1), (
        f"bf16 max abs diff = {jnp.max(jnp.abs(out_bf16.astype(jnp.float32) - ref))}")

    print("KERNEL_OK")
</pallas_src>

<mosaic_0001>
module attributes {stable_mosaic.version = 11 : i64} {
  func.func @_conv1_kernel(%arg0: i32, %arg1: i32, %arg2: memref<1x16x16x128xf32, #tpu.memory_space<vmem>>, %arg3: memref<128x128xf32, #tpu.memory_space<vmem>>, %arg4: memref<1x16x16x128xf32, #tpu.memory_space<vmem>>, %arg5: memref<1x1x8x128xf32, #tpu.memory_space<vmem>>) attributes {dimension_semantics = [#tpu.dimension_semantics<parallel>, #tpu.dimension_semantics<parallel>], iteration_bounds = array<i64: 2, 1>, scalar_prefetch = 0 : i64, scratch_operands = 0 : i64, tpu.core_type = #tpu.core_type<tc>, window_params = [{transform_indices = @transform_0, window_bounds = array<i64: 1, 16, 16, 128>}, {pipeline_mode = #tpu.pipeline_mode<synchronous>, transform_indices = @transform_1, window_bounds = array<i64: 128, 128>}, {transform_indices = @transform_2, window_bounds = array<i64: 1, 16, 16, 128>}, {transform_indices = @transform_3, window_bounds = array<i64: 1, 1, 8, 128>}]} {
    %c0 = arith.constant 0 : index
    %c0_0 = arith.constant 0 : index
    %c0_1 = arith.constant 0 : index
    %c0_2 = arith.constant 0 : index
    %0 = vector.load %arg2[%c0, %c0_0, %c0_1, %c0_2] : memref<1x16x16x128xf32, #tpu.memory_space<vmem>>, vector<1x16x16x128xf32>
    %1 = vector.shape_cast %0 : vector<1x16x16x128xf32> to vector<16x16x128xf32>
    %2 = vector.shape_cast %1 : vector<16x16x128xf32> to vector<256x128xf32>
    %c0_3 = arith.constant 0 : index
    %c0_4 = arith.constant 0 : index
    %3 = vector.load %arg3[%c0_3, %c0_4] : memref<128x128xf32, #tpu.memory_space<vmem>>, vector<128x128xf32>
    %cst = arith.constant dense<0.000000e+00> : vector<256x128xf32>
    %4 = tpu.matmul %2, %3, %cst {dimension_numbers = #tpu.dot_dimension_numbers<[1], [0], [0], [1], [0, 0, 1, 1], [], []>} : vector<256x128xf32>, vector<128x128xf32>, vector<256x128xf32> -> vector<256x128xf32>
    %5 = vector.shape_cast %4 : vector<256x128xf32> to vector<16x16x128xf32>
    %c0_5 = arith.constant 0 : index
    %c0_6 = arith.constant 0 : index
    %c0_7 = arith.constant 0 : index
    %c0_8 = arith.constant 0 : index
    %6 = vector.load %arg4[%c0_5, %c0_6, %c0_7, %c0_8] : memref<1x16x16x128xf32, #tpu.memory_space<vmem>>, vector<1x16x16x128xf32>
    %7 = vector.shape_cast %6 : vector<1x16x16x128xf32> to vector<16x16x128xf32>
    %8 = vector.shape_cast %5 : vector<16x16x128xf32> to vector<1x16x16x128xf32>
    tpu.vector_store %arg4[%c0_5, %c0_6, %c0_7, %c0_8], %8 {strides = array<i32>} : memref<1x16x16x128xf32, #tpu.memory_space<vmem>>, vector<1x16x16x128xf32>,
    %cst_9 = arith.constant dense<0.000000e+00> : vector<128xf32>
    %9 = vector.multi_reduction <add>, %4, %cst_9 [0] : vector<256x128xf32> to vector<128xf32>
    %10 = vector.shape_cast %9 : vector<128xf32> to vector<1x128xf32>
    %c0_10 = arith.constant 0 : index
    %c0_11 = arith.constant 0 : index
    %c0_12 = arith.constant 0 : index
    %c0_13 = arith.constant 0 : index
    %11 = vector.load %arg5[%c0_10, %c0_11, %c0_12, %c0_13] : memref<1x1x8x128xf32, #tpu.memory_space<vmem>>, vector<1x1x1x128xf32>
    %12 = vector.shape_cast %11 : vector<1x1x1x128xf32> to vector<1x128xf32>
    %13 = vector.shape_cast %10 : vector<1x128xf32> to vector<1x1x1x128xf32>
    tpu.vector_store %arg5[%c0_10, %c0_11, %c0_12, %c0_13], %13 {strides = array<i32>} : memref<1x1x8x128xf32, #tpu.memory_space<vmem>>, vector<1x1x1x128xf32>,
    %14 = arith.mulf %4, %4 : vector<256x128xf32>
    %cst_14 = arith.constant dense<0.000000e+00> : vector<128xf32>
    %15 = vector.multi_reduction <add>, %14, %cst_14 [0] : vector<256x128xf32> to vector<128xf32>
    %16 = vector.shape_cast %15 : vector<128xf32> to vector<1x128xf32>
    %c0_15 = arith.constant 0 : index
    %c0_16 = arith.constant 0 : index
    %c1 = arith.constant 1 : index
    %c0_17 = arith.constant 0 : index
    %17 = vector.load %arg5[%c0_15, %c0_16, %c1, %c0_17] : memref<1x1x8x128xf32, #tpu.memory_space<vmem>>, vector<1x1x1x128xf32>
    %18 = vector.shape_cast %17 : vector<1x1x1x128xf32> to vector<1x128xf32>
    %19 = vector.shape_cast %16 : vector<1x128xf32> to vector<1x1x1x128xf32>
    tpu.vector_store %arg5[%c0_15, %c0_16, %c1, %c0_17], %19 {strides = array<i32>} : memref<1x1x8x128xf32, #tpu.memory_space<vmem>>, vector<1x1x1x128xf32>,
    return
  }
  func.func @transform_0(%arg0: i32, %arg1: i32) -> (i32, i32, i32, i32) {
    %c0_i32 = arith.constant 0 : i32
    %c0_i32_0 = arith.constant 0 : i32
    %c0_i32_1 = arith.constant 0 : i32
    return %arg0, %arg1, %c0_i32, %c0_i32_0 : i32, i32, i32, i32
  }
  func.func @transform_1(%arg0: i32, %arg1: i32) -> (i32, i32) {
    %c0_i32 = arith.constant 0 : i32
    %c0_i32_0 = arith.constant 0 : i32
    %c0_i32_1 = arith.constant 0 : i32
    return %c0_i32, %c0_i32_0 : i32, i32
  }
  func.func @transform_2(%arg0: i32, %arg1: i32) -> (i32, i32, i32, i32) {
    %c0_i32 = arith.constant 0 : i32
    %c0_i32_0 = arith.constant 0 : i32
    %c0_i32_1 = arith.constant 0 : i32
    return %arg0, %arg1, %c0_i32, %c0_i32_0 : i32, i32, i32, i32
  }
  func.func @transform_3(%arg0: i32, %arg1: i32) -> (i32, i32, i32, i32) {
    %c0_i32 = arith.constant 0 : i32
    %c0_i32_0 = arith.constant 0 : i32
    %c0_i32_1 = arith.constant 0 : i32
    return %arg0, %arg1, %c0_i32, %c0_i32_0 : i32, i32, i32, i32
  }
}

</mosaic_0001>

<bundles_post_ra>
// kernel: tpu_custom_call.1
= control target key start
LH: loop header
LB: loop body
LE: loop exit
PB: predicated region body
PF: predicated region fallthrough
CT: control target
= control target key end

     0   :  { %9 = vsyncpa [#allocation3], 0  ;;  %s1728_s0 = inlined_call_operand.hbm [shape: f32[2,16,16,128], index: 0, kind: input, shape index: {}]   ;;  %s1729_s1 = inlined_call_operand.hbm [shape: f32[128,128], index: 1, kind: input, shape index: {}]   ;;  %s1730_s2 = inlined_call_operand.hbm [shape: f32[2,16,16,128], index: 2, kind: output, shape index: {0}]   ;;  %s1731_s3 = inlined_call_operand.hbm [shape: f32[2,1,8,128], index: 3, kind: output, shape index: {1}]  }
   0x1   :  { %11 = vsyncpa [#allocation3 + $0x1], 0 }
   0x2   :  { %12 = vsyncpa [#allocation6], 0 }
   0x3   :  { %13 = vsyncpa [#allocation4], 0 }
   0x4   :  { %15 = vsyncpa [#allocation4 + $0x1], 0 }
   0x5   :  { %16 = vsyncpa [#allocation9], 0 }
   0x6   :  { %18 = vsyncpa [#allocation9 + $0x1], 0  ;;  %s1303_s12 = smov 0   ;;  %s1305_s13 = smov 0  }
   0x7   :  { %s1307_s14 = smov 0   ;;  %s1309_s15 = smov 0  }
   0x8   :  { %s1311_s16 = smov 0   ;;  %s1313_s17 = smov 0  }
   0x9 LB: > { %s817_s18 = sadd.s32 4294967295, %s1273_s17   ;;  %s818_s19 = sadd.s32 4294967294, %s1273_s17   ;;  %s1273_s17 = sphi %s1313_s17, %s24_s17   ;;  %s1269_s16 = sphi %s1311_s16, %s1755_s16   ;;  %s1265_s15 = sphi %s1309_s15, %s1754_s15   ;;  %s1261_s14 = sphi %s1307_s14, %s1753_s14   ;;  %s1257_s13 = sphi %s1305_s13, %s1752_s13   ;;  %s1253_s12 = sphi %s1303_s12, %s1751_s12  }
   0xa   : > { %p58_p0 = scmp.ne.s32.totalorder %s1257_s13, %s1253_s12  ;;  %p1337_p1 = scmp.eq.s32.totalorder %s817_s18, 0 }
   0xb   : > { %p1341_p2 = scmp.eq.s32.totalorder %s817_s18, 1  ;;  %p111_p3 = scmp.eq.s32.totalorder %s818_s19, 1 }
   0xc   : > { %s1736_s20 = scalar_select %p1337_p1, 1, 0 }
   0xd   : > { %s1737_s21 = scalar_select %p1341_p2, 1, 0 }
   0xe   : > { %p1347_p4 = por %p1337_p1, %p58_p0  ;;  %p819_p5 = scmp.ge.s32.totalorder %s1273_s17, 1 }
   0xf   : > { %p1352_p6 = por %p111_p3, %p58_p0  ;;  %p146_p7 = scmp.lt.s32.totalorder %s1273_s17, 3 }
  0x10   : > { %s1738_s22 = scalar_select %p1347_p4, 1, 0 }
  0x11   : > { %s1739_s23 = scalar_select %p1352_p6, 1, 0 }
  0x12   : > { %p1357_p8 = pnand %p819_p5, %p146_p7  ;;  %s1275_s25 = smov [#allocation5]  }
  0x13   : > { %s158_s26 = sshll.u32 %s1275_s25, 4  ;;  %s36_s28 = sadd.s32 1, %s1269_s16  ;;  %s159_s26 = int_to_ptr.vmem [resolvable:$true] %s158_s26 }
  0x14   : > { %s1740_s24 = scalar_select %p1357_p8, 1, 0 }
  0x15   : > { %p1025_p9 = pneg %p1357_p8  ;;  %s1097_s4 = scalar_lea.hbm %s1729_s1, 2048 }
  0x16   : > { %p1098_p12 = scmp.ne.s32.totalorder %s1729_s1, %s1097_s4  ;;  %p1104_p5 = scmp.lt.u32.totalorder %s1097_s4, %s1729_s1 }
  0x17   : > { %p1366_p11 = pnand %p1025_p9, %p1337_p1 }
  0x19   : > { %p1099_p13 = pneg %p1366_p11 }
  0x1b   : > { %p1100_p0 = pnand %p1099_p13, %p1098_p12 }
  0x1d   : > { %p1101_p3 = pneg %p1100_p0 }
  0x1f   : > { %p1106_p7 = pnand %p1104_p5, %p1101_p3 }
  0x21   : > { %1109 = shalt.err (!%p1106_p7)
}
  0x22   : > { %s1110_s9 = scalar_lea.vmem %s159_s26, 2048  ;;  %p1118_p1 = scmp.lt.s32.totalorder %s159_s26, %s159_s26 }
  0x23   : > { %p1111_p9 = scmp.ne.s32.totalorder %s159_s26, %s1110_s9  ;;  %p1119_p4 = scmp.lt.s32.totalorder %s1110_s9, %s1110_s9 }
  0x25   : > { %p1113_p10 = pnand %p1111_p9, %p1099_p13  ;;  %p1120_p8 = por %p1119_p4, %p1118_p1 }
  0x27   : > { %p1114_p6 = pneg %p1113_p10 }
  0x29   : > { %p1121_p2 = pnand %p1120_p8, %p1114_p6 }
  0x2b   : > { %1124 = shalt.err (!%p1121_p2)
}
  0x2c   : > { %s1276_s10 = smov 128   ;;  %s1277_s11 = smov 8  }
  0x2d   : > { %1028 = dma.hbm_to_vmem [thread:$0]  (!%p1366_p11), %s1729_s1, 2048, %s159_s26, [#allocation6], %s1276_s10, %s1276_s10, %s1277_s11  }
  0x2e   : > { %p38_p1 = scmp.ge.s32.totalorder %s36_s28, 2  ;;  %s45_s25 = sadd.s32 1, %s1261_s14 }
  0x2f   : > { %p52_p2 = scmp.ne.s32.totalorder %s1261_s14, %s1257_s13  ;;  %p53_p4 = scmp.eq.s32.totalorder %s1273_s17, 0 }
  0x30   : > { %s1757_s28 = smov (%p38_p1, %s36_s28), 0  ;;  %p1743_p8 = scmp.ne.s32.totalorder %s1737_s21, 0 }
  0x31   : > { %p1396_p6 = por %p53_p4, %p52_p2  ;;  %s40_s30 = ssub.s32 %s1269_s16, %s1757_s28 }
  0x32   : > { %p1402_p10 = por %p1743_p8, %p52_p2  ;;  %p1041_p12 = scmp.lt.s32.totalorder %s1273_s17, 2 }
  0x33   : > { %p43_p11 = scmp.eq.s32.totalorder %s40_s30, 0  ;;  %s172_s26 = sand.u32 1, %s1261_s14  }
  0x34   : > { %s822_s4 = sshll.u32 %s172_s26, 8  ;;  %s837_s6 = sshll.u32 %s1269_s16, 12 }
  0x35   : > { %s1411_s5 = scalar_select %p43_p11, %s1261_s14, %s45_s25  }
  0x36   : > { %s1417_s9 = scalar_lea.hbm %s1728_s0, %s837_s6  ;;  %s176_s21 = scalar_lea.vmem [#allocation2], %s822_s4 }
  0x37   : > { %s186_s18 = sshll.u32 %s176_s21, 4  ;;  %p1423_p13 = pnand %p1041_p12, %p1396_p6  ;;  %s1419_s18 = int_to_ptr.vmem [resolvable:$true] %s186_s18 }
  0x38   : > { %s1427_s25 = scalar_lea.sflag [#allocation3], %s172_s26  ;;  %s1125_s30 = scalar_lea.hbm %s1417_s9, 4096 }
  0x39   : > { %p1126_p0 = scmp.ne.s32.totalorder %s1417_s9, %s1125_s30  ;;  %p1127_p3 = pneg %p1423_p13 }
  0x3a   : > { %s1130_s29 = scalar_lea.hbm %s1728_s0, 8192  ;;  %p1131_p9 = scmp.lt.u32.totalorder %s1417_s9, %s1728_s0 }
  0x3b   : > { %p1128_p5 = pnand %p1127_p3, %p1126_p0  ;;  %p1132_p1 = scmp.lt.u32.totalorder %s1130_s29, %s1125_s30 }
  0x3c   : > { %p1134_p4 = scmp.lt.u32.totalorder %s1125_s30, %s1417_s9 }
  0x3d   : > { %p1129_p7 = pneg %p1128_p5  ;;  %p1133_p2 = por %p1132_p1, %p1131_p9 }
  0x3f   : > { %p1135_p6 = por %p1134_p4, %p1133_p2 }
  0x41   : > { %p1136_p8 = pnand %p1135_p6, %p1129_p7 }
  0x43   : > { %1139 = shalt.err (!%p1136_p8)
}
  0x44   : > { %s1140_s26 = scalar_lea.vmem %s1419_s18, 4096  ;;  %s1278_s21 = smov [#allocation2]  }
  0x45   : > { %p1141_p12 = scmp.ne.s32.totalorder %s1419_s18, %s1140_s26  ;;  %s1145_s4 = sshll.u32 %s1278_s21, 4  ;;  %s1146_s4 = int_to_ptr.vmem [resolvable:$false] %s1145_s4 }
  0x46   : > { %s1147_s6 = scalar_lea.vmem %s1146_s4, 8192  ;;  %p1148_p5 = scmp.lt.s32.totalorder %s1419_s18, %s1146_s4 }
  0x47   : > { %p1143_p11 = pnand %p1141_p12, %p1127_p3  ;;  %p1149_p9 = scmp.lt.s32.totalorder %s1147_s6, %s1140_s26 }
  0x49   : > { %p1144_p0 = pneg %p1143_p11  ;;  %p1150_p1 = por %p1149_p9, %p1148_p5 }
  0x4b   : > { %p1151_p2 = pnand %p1150_p1, %p1144_p0 }
  0x4d   : > { %1154 = shalt.err (!%p1151_p2)
}
  0x4e   : > { %1032 = dma.hbm_to_vmem [thread:$0]  (!%p1423_p13), %s1417_s9, 4096, %s1419_s18, %s1427_s25, %s1276_s10, %s1276_s10, %s1277_s11  }
  0x4f   : > { %p1746_p3 = scmp.ne.s32.totalorder %s1740_s24, 0 }
  0x50   : > { %s1461_s30 = sand.u32 (!%p1746_p3), 1, %s1257_s13   ;;  %p1747_p7 = scmp.ne.s32.totalorder (!%p1746_p3), %s1738_s22, 0 }
  0x51   : > { %198 = sbr.rel (%p1746_p3) target bundleno = 443 (0x1bb), region = 28  ;;  %s826_s29 = sshll.u32 (!%p1746_p3), %s1461_s30, 8 }
  0x52   : > { %s201_s7 = scalar_lea.sflag (!%p1746_p3), [#allocation3], %s1461_s30  ;;  %s1467_s19 = scalar_lea.vmem (!%p1746_p3), [#allocation2], %s826_s29 }
  0x58   : > { %1236 = dma.done.wait (%p1747_p7), %s201_s7, 4096  }
  0x59   : > { %1238 = vsyncadd (%p1747_p7), %s201_s7, 4294963200  ;;  %p1748_p13 = scmp.ne.s32.totalorder %s1736_s20, 0 }
  0x5b   : > { %1240 = dma.done.wait (%p1748_p13), [#allocation6], 2048  }
  0x5c   : > { %1242 = vsyncadd (%p1748_p13), [#allocation6], 4294965248  ;;  %v270_v0 = vld [vmem:[#allocation5] sm:$0xff]  ;;  %v271_v1 = vld [vmem:[#allocation5 + $0x8] sm:$0xff]  ;;  %s1513_s20 = scalar_lea.vmem [#allocation7], %s826_s29  ;;  %s838_s22 = sshll.u32 %s1265_s15, 12 }
  0x5d   : > { %v272_v2 = vld [vmem:[#allocation5 + $0x10] sm:$0xff]  ;;  %v967_v3 = vpack.c.bf16 %v271_v1, %v270_v0  ;;  %v273_v4 = vld [vmem:[#allocation5 + $0x18] sm:$0xff]  ;;  %v274_v6 = vld [vmem:[#allocation5 + $0x20] sm:$0xff]  ;;  %s673_s24 = sshll.u32 %s1513_s20, 4  ;;  %s1588_s9 = scalar_lea.hbm %s1730_s2, %s838_s22  ;;  %s1590_s24 = int_to_ptr.vmem [resolvable:$true] %s673_s24 }
  0x5e   : > { %v971_v5 = vpack.c.bf16 %v273_v4, %v272_v2  ;;  %v275_v7 = vld [vmem:[#allocation5 + $0x28] sm:$0xff]  ;;  %v238_v9 = vld [vmem:[%s1467_s19] sm:$0xff]  ;;  %v276_v10 = vld [vmem:[#allocation5 + $0x30] sm:$0xff]  ;;  %s652_s18 = scalar_lea.sflag [#allocation4], %s1461_s30  ;;  %s1155_s25 = scalar_lea.vmem %s1590_s24, 4096 }
  0x5f   : > { %968 = vmatprep.subr.bf16.mxu0 %v967_v3  ;;  %999 = vmatprep.subr.bf16.mxu1 %v967_v3  ;;  %v975_v8 = vpack.c.bf16 %v275_v7, %v274_v6  ;;  %v277_v11 = vld [vmem:[#allocation5 + $0x38] sm:$0xff]  ;;  %v278_v13 = vld [vmem:[#allocation5 + $0x40] sm:$0xff]  ;;  %v279_v14 = vld [vmem:[#allocation5 + $0x48] sm:$0xff]  ;;  %p1156_p4 = scmp.ne.s32.totalorder %s1590_s24, %s1155_s25  ;;  %s1279_s8 = smov [#allocation7]  }
  0x60   : > { %970 = vmatpush3.bf16.msra.mxu0 %v967_v3  ;;  %1007 = vmatpush3.bf16.msra.mxu1 %v967_v3  ;;  %v979_v12 = vpack.c.bf16 %v277_v11, %v276_v10  ;;  %v254_v15 = vld [vmem:[%s1467_s19 + $0x80] sm:$0xff]  ;;  %v983_v16 = vpack.c.bf16 %v279_v14, %v278_v13  ;;  %v280_v17 = vld [vmem:[#allocation5 + $0x50] sm:$0xff]  ;;  %v281_v18 = vld [vmem:[#allocation5 + $0x58] sm:$0xff]  ;;  %s1159_s26 = sshll.u32 %s1279_s8, 4  ;;  %s1160_s26 = int_to_ptr.vmem [resolvable:$false] %s1159_s26 }
  0x61   : > { %972 = vmatprep.subr.bf16.mxu0 %v971_v5  ;;  %1000 = vmatprep.subr.bf16.mxu1 %v971_v5  ;;  %v987_v19 = vpack.c.bf16 %v281_v18, %v280_v17  ;;  %v282_v20 = vld [vmem:[#allocation5 + $0x60] sm:$0xff]  ;;  %v283_v21 = vld [vmem:[#allocation5 + $0x68] sm:$0xff]  ;;  %v284_v23 = vld [vmem:[#allocation5 + $0x70] sm:$0xff]  ;;  %p1157_p6 = pnand %p1156_p4, %p1402_p10  ;;  %s1161_s21 = scalar_lea.vmem %s1160_s26, 8192 }
  0x62   : > { %919 = vmatprep.mubr.f32.mxu0 %v238_v9  ;;  %943 = vmatprep.mubr.f32.mxu1 %v254_v15  ;;  %v991_v22 = vpack.c.bf16 %v283_v21, %v282_v20  ;;  %v285_v24 = vld [vmem:[#allocation5 + $0x78] sm:$0xff]  ;;  %v239_v26 = vld [vmem:[%s1467_s19 + $0x8] sm:$0xff]  ;;  %v240_v28 = vld [vmem:[%s1467_s19 + $0x10] sm:$0xff]  ;;  %p1162_p12 = scmp.lt.s32.totalorder %s1590_s24, %s1160_s26  ;;  %p1163_p11 = scmp.lt.s32.totalorder %s1161_s21, %s1155_s25 }
  0x63   : > { %v995_v25 = vpack.c.bf16 %v285_v24, %v284_v23  ;;  %v255_v27 = vld [vmem:[%s1467_s19 + $0x88] sm:$0xff]  ;;  %v256_v29 = vld [vmem:[%s1467_s19 + $0x90] sm:$0xff]  ;;  %v241_v30 = vld [vmem:[%s1467_s19 + $0x18] sm:$0xff]  ;;  %p1158_p8 = pneg %p1157_p6 }
  0x64   : > { %974 = vmatpush3.bf16.msra.mxu0 %v971_v5  ;;  %1008 = vmatpush3.bf16.msra.mxu1 %v971_v5  ;;  %v257_v31 = vld [vmem:[%s1467_s19 + $0x98] sm:$0xff]  ;;  %v242_v32 = vld [vmem:[%s1467_s19 + $0x20] sm:$0xff]  ;;  %v243_v34 = vld [vmem:[%s1467_s19 + $0x28] sm:$0xff]  ;;  %p1164_p0 = por %p1163_p11, %p1162_p12 }
  0x65   : > { %976 = vmatprep.subr.bf16.mxu0 %v975_v8  ;;  %1001 = vmatprep.subr.bf16.mxu1 %v975_v8  ;;  %v258_v33 = vld [vmem:[%s1467_s19 + $0xa0] sm:$0xff]  ;;  %v259_v35 = vld [vmem:[%s1467_s19 + $0xa8] sm:$0xff]  ;;  %v244_v36 = vld [vmem:[%s1467_s19 + $0x30] sm:$0xff] }
  0x66   : > { %v260_v37 = vld [vmem:[%s1467_s19 + $0xb0] sm:$0xff]  ;;  %v245_v38 = vld [vmem:[%s1467_s19 + $0x38] sm:$0xff]  ;;  %v246_v40 = vld [vmem:[%s1467_s19 + $0x40] sm:$0xff]  ;;  %p1165_p5 = pnand %p1164_p0, %p1158_p8 }
  0x67   : > { %v261_v39 = vld [vmem:[%s1467_s19 + $0xb8] sm:$0xff]  ;;  %v262_v41 = vld [vmem:[%s1467_s19 + $0xc0] sm:$0xff]  ;;  %v247_v42 = vld [vmem:[%s1467_s19 + $0x48] sm:$0xff] }
  0x68   : > { %978 = vmatpush3.bf16.msra.mxu0 %v975_v8  ;;  %1009 = vmatpush3.bf16.msra.mxu1 %v975_v8  ;;  %v263_v43 = vld [vmem:[%s1467_s19 + $0xc8] sm:$0xff]  ;;  %v248_v44 = vld [vmem:[%s1467_s19 + $0x50] sm:$0xff]  ;;  %v249_v46 = vld [vmem:[%s1467_s19 + $0x58] sm:$0xff] }
  0x69   : > { %980 = vmatprep.subr.bf16.mxu0 %v979_v12  ;;  %1002 = vmatprep.subr.bf16.mxu1 %v979_v12  ;;  %v264_v45 = vld [vmem:[%s1467_s19 + $0xd0] sm:$0xff]  ;;  %v265_v47 = vld [vmem:[%s1467_s19 + $0xd8] sm:$0xff]  ;;  %v250_v48 = vld [vmem:[%s1467_s19 + $0x60] sm:$0xff] }
  0x6a   : > { %v266_v49 = vld [vmem:[%s1467_s19 + $0xe0] sm:$0xff]  ;;  %v251_v50 = vld [vmem:[%s1467_s19 + $0x68] sm:$0xff]  ;;  %v252_v52 = vld [vmem:[%s1467_s19 + $0x70] sm:$0xff] }
  0x6b   : > { %v267_v51 = vld [vmem:[%s1467_s19 + $0xe8] sm:$0xff]  ;;  %v268_v53 = vld [vmem:[%s1467_s19 + $0xf0] sm:$0xff]  ;;  %v253_v54 = vld [vmem:[%s1467_s19 + $0x78] sm:$0xff] }
  0x6c   : > { %982 = vmatpush3.bf16.msra.mxu0 %v979_v12  ;;  %1010 = vmatpush3.bf16.msra.mxu1 %v979_v12  ;;  %v269_v55 = vld [vmem:[%s1467_s19 + $0xf8] sm:$0xff] }
  0x6d   : > { %984 = vmatprep.subr.bf16.mxu0 %v983_v16  ;;  %1003 = vmatprep.subr.bf16.mxu1 %v983_v16 }
  0x70   : > { %986 = vmatpush3.bf16.msra.mxu0 %v983_v16  ;;  %1011 = vmatpush3.bf16.msra.mxu1 %v983_v16 }
  0x71   : > { %988 = vmatprep.subr.bf16.mxu0 %v987_v19  ;;  %1004 = vmatprep.subr.bf16.mxu1 %v987_v19 }
  0x74   : > { %990 = vmatpush3.bf16.msra.mxu0 %v987_v19  ;;  %1012 = vmatpush3.bf16.msra.mxu1 %v987_v19 }
  0x75   : > { %992 = vmatprep.subr.bf16.mxu0 %v991_v22  ;;  %1005 = vmatprep.subr.bf16.mxu1 %v991_v22 }
  0x78   : > { %994 = vmatpush3.bf16.msra.mxu0 %v991_v22  ;;  %1013 = vmatpush3.bf16.msra.mxu1 %v991_v22 }
  0x79   : > { %996 = vmatprep.subr.bf16.mxu0 %v995_v25  ;;  %1006 = vmatprep.subr.bf16.mxu1 %v995_v25 }
  0x7c   : > { %998 = vmatpush3.bf16.msra.mxu0 %v995_v25  ;;  %1014 = vmatpush3.bf16.msra.mxu1 %v995_v25 }
  0x7f   : > { %920 = vmatmul.mubr.f32.vlgmr.msra.gmra.mrb[0].mxu0 %v239_v26  ;;  %944 = vmatmul.mubr.f32.vlgmr.msra.gmra.mrb[0].mxu1 %v255_v27 }
  0x80   : > { %922 = vmatprep.mubr.f32.mxu0 %v240_v28  ;;  %946 = vmatprep.mubr.f32.mxu1 %v256_v29 }
  0x83   : > { %923 = vmatmul.mubr.f32.gmra.mrb[2].mxu0 %v241_v30  ;;  %947 = vmatmul.mubr.f32.gmra.mrb[2].mxu1 %v257_v31 }
  0x84   : > { %925 = vmatprep.mubr.f32.mxu0 %v242_v32  ;;  %949 = vmatprep.mubr.f32.mxu1 %v258_v33 }
  0x87   : > { %926 = vmatmul.mubr.f32.gmra.mrb[4].mxu0 %v243_v34  ;;  %950 = vmatmul.mubr.f32.gmra.mrb[4].mxu1 %v259_v35 }
  0x88   : > { %928 = vmatprep.mubr.f32.mxu0 %v244_v36  ;;  %952 = vmatprep.mubr.f32.mxu1 %v260_v37 }
  0x8b   : > { %929 = vmatmul.mubr.f32.gmra.mrb[6].mxu0 %v245_v38  ;;  %953 = vmatmul.mubr.f32.gmra.mrb[6].mxu1 %v261_v39 }
  0x8c   : > { %931 = vmatprep.mubr.f32.mxu0 %v246_v40  ;;  %955 = vmatprep.mubr.f32.mxu1 %v262_v41 }
  0x8f   : > { %932 = vmatmul.mubr.f32.gmra.mrb[8].mxu0 %v247_v42  ;;  %956 = vmatmul.mubr.f32.gmra.mrb[8].mxu1 %v263_v43 }
  0x90   : > { %934 = vmatprep.mubr.f32.mxu0 %v248_v44  ;;  %958 = vmatprep.mubr.f32.mxu1 %v264_v45 }
  0x93   : > { %935 = vmatmul.mubr.f32.gmra.mrb[10].mxu0 %v249_v46  ;;  %959 = vmatmul.mubr.f32.gmra.mrb[10].mxu1 %v265_v47 }
  0x94   : > { %937 = vmatprep.mubr.f32.mxu0 %v250_v48  ;;  %961 = vmatprep.mubr.f32.mxu1 %v266_v49 }
  0x97   : > { %938 = vmatmul.mubr.f32.gmra.mrb[12].mxu0 %v251_v50  ;;  %962 = vmatmul.mubr.f32.gmra.mrb[12].mxu1 %v267_v51 }
  0x98   : > { %940 = vmatprep.mubr.f32.mxu0 %v252_v52  ;;  %964 = vmatprep.mubr.f32.mxu1 %v268_v53 }
  0x9b   : > { %941 = vmatmul.mubr.f32.gmra.mrb[14].mxu0 %v253_v54  ;;  %965 = vmatmul.mubr.f32.gmra.mrb[14].mxu1 %v269_v55 }
 0x152   : > { %v921_v56 = vpop.f32.mrb[0].mxu0  ;;  %v1509_v57 = vpop.f32.mrb[0].mxu1 }
 0x153   : > { %512 = vst [vmem:[%s1513_s20 + $0x8] sm:$0xff] %v921_v56  ;;  %v582_v58 = vmul.f32 %v921_v56, %v921_v56  ;;  %v352_v59 = vpop.f32.mrb[1].mxu0  ;;  %528 = vst [vmem:[%s1513_s20 + $0x88] sm:$0xff] %v1509_v57  ;;  %v1518_v60 = vpop.f32.mrb[1].mxu1 }
 0x154   : > { %511 = vst [vmem:[%s1513_s20] sm:$0xff] %v352_v59  ;;  %v543_v61 = vadd.f32 %v921_v56, %v352_v59  ;;  %v581_v62 = vmul.f32 %v352_v59, %v352_v59  ;;  %527 = vst [vmem:[%s1513_s20 + $0x80] sm:$0xff] %v1518_v60 }
 0x156   : > { %v613_v63 = vadd.f32 %v582_v58, %v581_v62  ;;  %v924_v0 = vpop.f32.mrb[2].mxu0  ;;  %v1523_v1 = vpop.f32.mrb[2].mxu1 }
 0x157   : > { %514 = vst [vmem:[%s1513_s20 + $0x18] sm:$0xff] %v924_v0  ;;  %v362_v2 = vpop.f32.mrb[3].mxu0  ;;  %530 = vst [vmem:[%s1513_s20 + $0x98] sm:$0xff] %v1523_v1  ;;  %v1528_v3 = vpop.f32.mrb[3].mxu1  ;;  %v584_v6 = vmul.f32 %v924_v0, %v924_v0 }
 0x158   : > { %513 = vst [vmem:[%s1513_s20 + $0x10] sm:$0xff] %v362_v2  ;;  %v544_v4 = vadd.f32 %v543_v61, %v362_v2  ;;  %v583_v5 = vmul.f32 %v362_v2, %v362_v2  ;;  %529 = vst [vmem:[%s1513_s20 + $0x90] sm:$0xff] %v1528_v3 }
 0x15a   : > { %v614_v7 = vadd.f32 %v613_v63, %v583_v5  ;;  %v927_v8 = vpop.f32.mrb[4].mxu0  ;;  %v545_v9 = vadd.f32 %v924_v0, %v544_v4  ;;  %v1533_v10 = vpop.f32.mrb[4].mxu1 }
 0x15b   : > { %516 = vst [vmem:[%s1513_s20 + $0x28] sm:$0xff] %v927_v8  ;;  %v372_v11 = vpop.f32.mrb[5].mxu0  ;;  %532 = vst [vmem:[%s1513_s20 + $0xa8] sm:$0xff] %v1533_v10  ;;  %v1538_v12 = vpop.f32.mrb[5].mxu1  ;;  %v586_v16 = vmul.f32 %v927_v8, %v927_v8 }
 0x15c   : > { %515 = vst [vmem:[%s1513_s20 + $0x20] sm:$0xff] %v372_v11  ;;  %v546_v13 = vadd.f32 %v545_v9, %v372_v11  ;;  %v585_v14 = vmul.f32 %v372_v11, %v372_v11  ;;  %v615_v15 = vadd.f32 %v614_v7, %v584_v6  ;;  %531 = vst [vmem:[%s1513_s20 + $0xa0] sm:$0xff] %v1538_v12 }
 0x15e   : > { %v616_v17 = vadd.f32 %v615_v15, %v585_v14  ;;  %v930_v18 = vpop.f32.mrb[6].mxu0  ;;  %v547_v19 = vadd.f32 %v927_v8, %v546_v13  ;;  %v1543_v20 = vpop.f32.mrb[6].mxu1 }
 0x15f   : > { %518 = vst [vmem:[%s1513_s20 + $0x38] sm:$0xff] %v930_v18  ;;  %v382_v21 = vpop.f32.mrb[7].mxu0  ;;  %534 = vst [vmem:[%s1513_s20 + $0xb8] sm:$0xff] %v1543_v20  ;;  %v1548_v22 = vpop.f32.mrb[7].mxu1  ;;  %v588_v26 = vmul.f32 %v930_v18, %v930_v18 }
 0x160   : > { %517 = vst [vmem:[%s1513_s20 + $0x30] sm:$0xff] %v382_v21  ;;  %v548_v23 = vadd.f32 %v547_v19, %v382_v21  ;;  %v587_v24 = vmul.f32 %v382_v21, %v382_v21  ;;  %v617_v25 = vadd.f32 %v616_v17, %v586_v16  ;;  %533 = vst [vmem:[%s1513_s20 + $0xb0] sm:$0xff] %v1548_v22 }
 0x162   : > { %v618_v27 = vadd.f32 %v617_v25, %v587_v24  ;;  %v933_v28 = vpop.f32.mrb[8].mxu0  ;;  %v549_v29 = vadd.f32 %v930_v18, %v548_v23  ;;  %v1553_v30 = vpop.f32.mrb[8].mxu1 }
 0x163   : > { %520 = vst [vmem:[%s1513_s20 + $0x48] sm:$0xff] %v933_v28  ;;  %v392_v31 = vpop.f32.mrb[9].mxu0  ;;  %536 = vst [vmem:[%s1513_s20 + $0xc8] sm:$0xff] %v1553_v30  ;;  %v1558_v32 = vpop.f32.mrb[9].mxu1  ;;  %v590_v36 = vmul.f32 %v933_v28, %v933_v28 }
 0x164   : > { %519 = vst [vmem:[%s1513_s20 + $0x40] sm:$0xff] %v392_v31  ;;  %v550_v33 = vadd.f32 %v549_v29, %v392_v31  ;;  %v589_v34 = vmul.f32 %v392_v31, %v392_v31  ;;  %v619_v35 = vadd.f32 %v618_v27, %v588_v26  ;;  %535 = vst [vmem:[%s1513_s20 + $0xc0] sm:$0xff] %v1558_v32 }
 0x166   : > { %v620_v37 = vadd.f32 %v619_v35, %v589_v34  ;;  %v936_v38 = vpop.f32.mrb[10].mxu0  ;;  %v551_v39 = vadd.f32 %v933_v28, %v550_v33  ;;  %v1563_v40 = vpop.f32.mrb[10].mxu1 }
 0x167   : > { %522 = vst [vmem:[%s1513_s20 + $0x58] sm:$0xff] %v936_v38  ;;  %v402_v41 = vpop.f32.mrb[11].mxu0  ;;  %538 = vst [vmem:[%s1513_s20 + $0xd8] sm:$0xff] %v1563_v40  ;;  %v1568_v42 = vpop.f32.mrb[11].mxu1  ;;  %v592_v46 = vmul.f32 %v936_v38, %v936_v38 }
 0x168   : > { %521 = vst [vmem:[%s1513_s20 + $0x50] sm:$0xff] %v402_v41  ;;  %v552_v43 = vadd.f32 %v551_v39, %v402_v41  ;;  %v591_v44 = vmul.f32 %v402_v41, %v402_v41  ;;  %v621_v45 = vadd.f32 %v620_v37, %v590_v36  ;;  %537 = vst [vmem:[%s1513_s20 + $0xd0] sm:$0xff] %v1568_v42 }
 0x16a   : > { %v622_v47 = vadd.f32 %v621_v45, %v591_v44  ;;  %v939_v48 = vpop.f32.mrb[12].mxu0  ;;  %v553_v49 = vadd.f32 %v936_v38, %v552_v43  ;;  %v1573_v50 = vpop.f32.mrb[12].mxu1 }
 0x16b   : > { %524 = vst [vmem:[%s1513_s20 + $0x68] sm:$0xff] %v939_v48  ;;  %v412_v51 = vpop.f32.mrb[13].mxu0  ;;  %540 = vst [vmem:[%s1513_s20 + $0xe8] sm:$0xff] %v1573_v50  ;;  %v1580_v52 = vpop.f32.mrb[13].mxu1  ;;  %v594_v56 = vmul.f32 %v939_v48, %v939_v48 }
 0x16c   : > { %523 = vst [vmem:[%s1513_s20 + $0x60] sm:$0xff] %v412_v51  ;;  %v554_v53 = vadd.f32 %v553_v49, %v412_v51  ;;  %v593_v54 = vmul.f32 %v412_v51, %v412_v51  ;;  %v623_v55 = vadd.f32 %v622_v47, %v592_v46  ;;  %539 = vst [vmem:[%s1513_s20 + $0xe0] sm:$0xff] %v1580_v52 }
 0x16e   : > { %v624_v58 = vadd.f32 %v623_v55, %v593_v54  ;;  %v942_v59 = vpop.f32.mrb[14].mxu0  ;;  %v555_v61 = vadd.f32 %v939_v48, %v554_v53  ;;  %v1592_v62 = vpop.f32.mrb[14].mxu1 }
 0x16f   : > { %526 = vst [vmem:[%s1513_s20 + $0x78] sm:$0xff] %v942_v59  ;;  %v422_v63 = vpop.f32.mrb[15].mxu0  ;;  %542 = vst [vmem:[%s1513_s20 + $0xf8] sm:$0xff] %v1592_v62  ;;  %v1597_v0 = vpop.f32.mrb[15].mxu1 }
 0x170   : > { %525 = vst [vmem:[%s1513_s20 + $0x70] sm:$0xff] %v422_v63  ;;  %v556_v2 = vadd.f32 %v555_v61, %v422_v63  ;;  %v595_v4 = vmul.f32 %v422_v63, %v422_v63  ;;  %v625_v5 = vadd.f32 %v624_v58, %v594_v56  ;;  %541 = vst [vmem:[%s1513_s20 + $0xf0] sm:$0xff] %v1597_v0 }
 0x171   : > { %1168 = shalt.err (!%p1165_p5)
}
 0x172   : > { %s1169_s4 = scalar_lea.hbm %s1588_s9, 4096  ;;  %s1173_s7 = scalar_lea.hbm %s1730_s2, 8192 }
 0x173   : > { %p1170_p9 = scmp.ne.s32.totalorder %s1588_s9, %s1169_s4  ;;  %p1174_p3 = scmp.lt.u32.totalorder %s1588_s9, %s1730_s2 }
 0x174   : > { %p1175_p7 = scmp.lt.u32.totalorder %s1173_s7, %s1169_s4  ;;  %p1177_p4 = scmp.lt.u32.totalorder %s1169_s4, %s1588_s9 }
 0x175   : > { %p1171_p1 = pnand %p1170_p9, %p1402_p10 }
 0x176   : > { %p1176_p13 = por %p1175_p7, %p1174_p3 }
 0x177   : > { %p1172_p2 = pneg %p1171_p1 }
 0x178   : > { %p1178_p6 = por %p1177_p4, %p1176_p13 }
 0x17a   : > { %p1179_p8 = pnand %p1178_p6, %p1172_p2 }
 0x17c   : > { %1182 = shalt.err (!%p1179_p8)
}
 0x17d   : > { %s1280_s22 = smov 128   ;;  %s1281_s10 = smov 8   ;;  %v596_v6 = vmul.f32 %v942_v59, %v942_v59  ;;  %v557_v7 = vadd.f32 %v942_v59, %v556_v2  ;;  %v626_v8 = vadd.f32 %v625_v5, %v595_v4  ;;  %v597_v9 = vmul.f32 %v1518_v60, %v1518_v60 }
 0x17e   : > { %1021 = dma.vmem_to_hbm [thread:$0]  (%p1402_p10), %s1590_s24, 4096, %s1588_s9, %s652_s18, %s1280_s22, %s1280_s22, %s1281_s10   ;;  %v598_v14 = vmul.f32 %v1509_v57, %v1509_v57  ;;  %v599_v17 = vmul.f32 %v1528_v3, %v1528_v3  ;;  %v600_v21 = vmul.f32 %v1523_v1, %v1523_v1  ;;  %v611_v48 = vmul.f32 %v1597_v0, %v1597_v0 }
 0x17f   : > { %v627_v11 = vadd.f32 %v626_v8, %v596_v6  ;;  %v558_v13 = vadd.f32 %v557_v7, %v1518_v60  ;;  %v601_v60 = vmul.f32 %v1538_v12, %v1538_v12  ;;  %v612_v51 = vmul.f32 %v1592_v62, %v1592_v62  ;;  %s829_s24 = sshll.u32 %s1461_s30, 3  ;;  %s834_s11 = sshll.u32 %s1265_s15, 7 }
 0x180   : > { %s235_s9 = scalar_lea.vmem [#allocation8], %s829_s24  ;;  %s1679_s26 = scalar_lea.hbm %s1731_s3, %s834_s11 }
 0x181   : > { %v628_v15 = vadd.f32 %v627_v11, %v597_v9  ;;  %v559_v16 = vadd.f32 %v1509_v57, %v558_v13  ;;  %v602_v57 = vmul.f32 %v1533_v10, %v1533_v10  ;;  %s690_s18 = sshll.u32 %s235_s9, 4  ;;  %s657_s21 = scalar_lea.sflag [#allocation9], %s1461_s30  ;;  %s1681_s18 = int_to_ptr.vmem [resolvable:$true] %s690_s18 }
 0x182   : > { %s1183_s4 = scalar_lea.vmem %s1681_s18, 128  ;;  %s1282_s15 = smov [#allocation8]  }
 0x183   : > { %v560_v18 = vadd.f32 %v559_v16, %v1528_v3  ;;  %v629_v19 = vadd.f32 %v628_v15, %v598_v14  ;;  %v603_v3 = vmul.f32 %v1548_v22, %v1548_v22  ;;  %p1184_p12 = scmp.ne.s32.totalorder %s1681_s18, %s1183_s4  ;;  %s1187_s6 = sshll.u32 %s1282_s15, 4  ;;  %s1188_s6 = int_to_ptr.vmem [resolvable:$false] %s1187_s6 }
 0x184   : > { %s1189_s29 = scalar_lea.vmem %s1188_s6, 256  ;;  %p1190_p5 = scmp.lt.s32.totalorder %s1681_s18, %s1188_s6 }
 0x185   : > { %v630_v23 = vadd.f32 %v629_v19, %v599_v17  ;;  %v561_v24 = vadd.f32 %v1523_v1, %v560_v18  ;;  %v604_v1 = vmul.f32 %v1543_v20, %v1543_v20  ;;  %p1185_p11 = pnand %p1184_p12, %p1402_p10  ;;  %p1191_p9 = scmp.lt.s32.totalorder %s1189_s29, %s1183_s4 }
 0x187   : > { %v562_v25 = vadd.f32 %v561_v24, %v1538_v12  ;;  %v631_v26 = vadd.f32 %v630_v23, %v600_v21  ;;  %v605_v12 = vmul.f32 %v1558_v32, %v1558_v32  ;;  %p1186_p0 = pneg %p1185_p11  ;;  %p1192_p1 = por %p1191_p9, %p1190_p5 }
 0x189   : > { %v632_v27 = vadd.f32 %v631_v26, %v601_v60  ;;  %v563_v28 = vadd.f32 %v1533_v10, %v562_v25  ;;  %v606_v10 = vmul.f32 %v1553_v30, %v1553_v30  ;;  %p1193_p2 = pnand %p1192_p1, %p1186_p0 }
 0x18b   : > { %v564_v29 = vadd.f32 %v563_v28, %v1548_v22  ;;  %v633_v31 = vadd.f32 %v632_v27, %v602_v57  ;;  %v607_v22 = vmul.f32 %v1568_v42, %v1568_v42 }
 0x18d   : > { %v634_v33 = vadd.f32 %v633_v31, %v603_v3  ;;  %v565_v34 = vadd.f32 %v1543_v20, %v564_v29  ;;  %v608_v20 = vmul.f32 %v1563_v40, %v1563_v40 }
 0x18f   : > { %v566_v35 = vadd.f32 %v565_v34, %v1558_v32  ;;  %v635_v36 = vadd.f32 %v634_v33, %v604_v1  ;;  %v609_v32 = vmul.f32 %v1580_v52, %v1580_v52 }
 0x191   : > { %v636_v37 = vadd.f32 %v635_v36, %v605_v12  ;;  %v567_v38 = vadd.f32 %v1553_v30, %v566_v35  ;;  %v610_v30 = vmul.f32 %v1573_v50, %v1573_v50 }
 0x193   : > { %v568_v39 = vadd.f32 %v567_v38, %v1568_v42  ;;  %v637_v41 = vadd.f32 %v636_v37, %v606_v10 }
 0x195   : > { %v638_v43 = vadd.f32 %v637_v41, %v607_v22  ;;  %v569_v44 = vadd.f32 %v1563_v40, %v568_v39 }
 0x197   : > { %v570_v45 = vadd.f32 %v569_v44, %v1580_v52  ;;  %v639_v46 = vadd.f32 %v638_v43, %v608_v20 }
 0x199   : > { %v640_v47 = vadd.f32 %v639_v46, %v609_v32  ;;  %v571_v42 = vadd.f32 %v1573_v50, %v570_v45 }
 0x19b   : > { %v572_v49 = vadd.f32 %v571_v42, %v1597_v0  ;;  %v641_v40 = vadd.f32 %v640_v47, %v610_v30 }
 0x19d   : > { %v573_v53 = vadd.f32 %v1592_v62, %v572_v49  ;;  %v642_v52 = vadd.f32 %v641_v40, %v611_v48 }
 0x19f   : > { %v574_v54 = vrot.slane %v573_v53, 4  ;;  %v643_v55 = vadd.f32 %v642_v52, %v612_v51 }
 0x1a1   : > { %v575_v56 = vadd.f32 %v574_v54, %v573_v53  ;;  %v644_v58 = vrot.slane %v643_v55, 4 }
 0x1a3   : > { %v576_v59 = vrot.slane %v575_v56, 2  ;;  %v645_v50 = vadd.f32 %v644_v58, %v643_v55 }
 0x1a5   : > { %v577_v61 = vadd.f32 %v576_v59, %v575_v56  ;;  %v646_v63 = vrot.slane %v645_v50, 2 }
 0x1a7   : > { %v578_v0 = vrot.slane %v577_v61, 1  ;;  %v647_v2 = vadd.f32 %v646_v63, %v645_v50 }
 0x1a9   : > { %v579_v4 = vadd.f32 %v578_v0, %v577_v61  ;;  %v648_v5 = vrot.slane %v647_v2, 1 }
 0x1ab   : > { %v649_v62 = vadd.f32 %v648_v5, %v647_v2  ;;  %580 = vst [vmem:[%s235_s9] sm:$0x1] %v579_v4 }
 0x1ad   : > { %650 = vst [vmem:[%s235_s9 + $0x1] sm:$0x1] %v649_v62 }
 0x1ae   : > { %1196 = shalt.err (!%p1193_p2)
}
 0x1af   : > { %s1197_s30 = scalar_lea.hbm %s1679_s26, 128  ;;  %s1201_s20 = scalar_lea.hbm %s1731_s3, 256 }
 0x1b0   : > { %p1198_p3 = scmp.ne.s32.totalorder %s1679_s26, %s1197_s30  ;;  %p1202_p4 = scmp.lt.u32.totalorder %s1679_s26, %s1731_s3 }
 0x1b1   : > { %p1203_p6 = scmp.lt.u32.totalorder %s1201_s20, %s1197_s30  ;;  %p1205_p12 = scmp.lt.u32.totalorder %s1197_s30, %s1679_s26 }
 0x1b2   : > { %p1199_p7 = pnand %p1198_p3, %p1402_p10 }
 0x1b3   : > { %p1204_p8 = por %p1203_p6, %p1202_p4 }
 0x1b4   : > { %p1200_p13 = pneg %p1199_p7 }
 0x1b5   : > { %p1206_p11 = por %p1205_p12, %p1204_p8 }
 0x1b7   : > { %p1207_p0 = pnand %p1206_p11, %p1200_p13 }
 0x1b9   : > { %1210 = shalt.err (!%p1207_p0)
}
 0x1ba   : > { %1022 = dma.vmem_to_hbm [thread:$0]  (%p1402_p10), %s1681_s18, 128, %s1679_s26, %s657_s21  }
 0x1bb PF: > { %s702_s24 = sand.u32 1, %s1253_s12   ;;  %p1749_p5 = scmp.ne.s32.totalorder %s1739_s23, 0 }
 0x1bc   : > { %p1750_p9 = scmp.ge.s32.totalorder %s1273_s17, 2  ;;  %s703_s11 = scalar_lea.sflag [#allocation4], %s702_s24 }
 0x1be   : > { %p1034_p1 = pnand %p1750_p9, %p1749_p5 }
 0x1c0   : > { %1244 = dma.done.wait (!%p1034_p1), %s703_s11, 4096  }
 0x1c1   : > { %1246 = vsyncadd (!%p1034_p1), %s703_s11, 4294963200  ;;  %s712_s9 = scalar_lea.sflag [#allocation9], %s702_s24 }
 0x1c2   : > { %1248 = dma.done.wait (!%p1034_p1), %s712_s9, 128  }
 0x1c3   : > { %1250 = vsyncadd (!%p1034_p1), %s712_s9, 4294967168  ;;  %s24_s17 = sadd.s32 1, %s1273_s17   ;;  %s1751_s12 = smov %s1257_s13 }
 0x1c4   : > { %p21_p2 = scmp.ge.s32.totalorder %s24_s17, 4   ;;  %s1752_s13 = smov %s1261_s14 }
 0x1c5   : > { %s1753_s14 = smov %s1411_s5  ;;  %s1754_s15 = smov %s1269_s16 }
 0x1c6   : > { %s1755_s16 = smov %s1757_s28  ;;  %23 = sbr.rel (!%p21_p2) target bundleno = 9 (0x9), region = 94 }
 0x1cd   :  { %717 = vsyncpa [#allocation3], 1 }
 0x1ce   :  { %719 = vsyncpa [#allocation3 + $0x1], 1 }
 0x1cf   :  { %720 = vsyncpa [#allocation6], 1 }
 0x1d0   :  { %721 = vsyncpa [#allocation4], 1 }
 0x1d1   :  { %723 = vsyncpa [#allocation4 + $0x1], 1 }
 0x1d2   :  { %724 = vsyncpa [#allocation9], 1 }
 0x1d3   :  { %726 = vsyncpa [#allocation9 + $0x1], 1 }

</bundles_post_ra>
